<compile_context>
chip_gen: v7x
topology: tpu7x:2x2x1
jax: 0.10.0
libtpu: 0.0.40
codegen_flags: <defaults>
</compile_context>

<pallas_src>
import functools

import jax
import jax.numpy as jnp
from jax.experimental import pallas as pl
from jax.experimental.pallas import tpu as pltpu

LANE = 128
MAX_BLOCK_ROWS = 1024  # 1024 x 128 f32 = 512 KiB per stream per buffer


def _make_focal_kernel(*, alpha, gamma, n_valid, rows_blk, has_weight,
                       emit_loss, needs_mask):
    alpha = float(alpha)
    gamma = float(gamma)

    def kernel(*refs):
        it = iter(refs)
        pred_ref = next(it)
        tgt_ref = next(it)
        w_ref = next(it) if has_weight else None
        if emit_loss:
            loss_ref = next(it)
            sum_ref = pos_ref = None
        else:
            loss_ref = None
            sum_ref = next(it)
            pos_ref = next(it)

        p = pred_ref[...].astype(jnp.float32)
        t = tgt_ref[...].astype(jnp.float32)

        valid = None
        if needs_mask:
            # Global flat element index of each slot in this tile.
            # (int32 is fine for inputs up to ~2.1B elements.)
            row0 = pl.program_id(0) * rows_blk
            rid = jax.lax.broadcasted_iota(jnp.int32, (rows_blk, LANE), 0) + row0
            lid = jax.lax.broadcasted_iota(jnp.int32, (rows_blk, LANE), 1)
            valid = (rid * LANE + lid) < n_valid
            # Clamp padded / out-of-bounds values BEFORE log/pow so garbage
            # (possibly NaN/Inf) never reaches the transcendentals.
            p = jnp.where(valid, p, 0.5)
            t = jnp.where(valid, t, 0.0)

        one_m_p = 1.0 - p

        # gamma specialization: integer gamma -> repeated multiplies (VPU),
        # otherwise fall back to pow (EUP exp/log).
        if gamma == int(gamma) and 0.0 <= gamma <= 8.0:
            gi = int(gamma)
            if gi == 0:
                pg = jnp.ones_like(p)
                qg = jnp.ones_like(p)
            else:
                pg = p
                qg = one_m_p
                for _ in range(gi - 1):
                    pg = pg * p
                    qg = qg * one_m_p
        else:
            pg = p ** gamma
            qg = one_m_p ** gamma

        ploss = -t * qg * jnp.log(p + 1e-10)
        nloss = -(1.0 - t) * pg * jnp.log(one_m_p + 1e-10)
        if alpha >= 0:
            loss = alpha * ploss + (1.0 - alpha) * nloss
        else:
            loss = ploss + nloss

        if has_weight:
            w = w_ref[...].astype(jnp.float32)
            if valid is not None:
                w = jnp.where(valid, w, 0.0)
            loss = loss * w
        elif valid is not None:
            loss = jnp.where(valid, loss, 0.0)

        if emit_loss:
            loss_ref[...] = loss.astype(loss_ref.dtype)
        else:
            # Per-grid-step partial reductions (lane-wise); final cross-lane
            # reduce happens in the wrapper.
            sum_ref[...] = jnp.sum(loss, axis=0, keepdims=True)
            pos = (t >= 1.0).astype(jnp.float32)  # t already masked if needed
            pos_ref[...] = jnp.sum(pos, axis=0, keepdims=True)

    return kernel


def focal_loss(pred, target, weight=None, *, alpha=-1.0, gamma=2.0,
               reduction="instance"):
    reduction = reduction.lower()
    pred = jnp.asarray(pred)
    orig_shape = pred.shape
    n = int(pred.size)

    def _prep(x):
        x = jnp.asarray(x)
        if x.dtype not in (jnp.float32, jnp.bfloat16, jnp.float16):
            x = x.astype(jnp.float32)
        return jnp.ravel(x)

    p1 = _prep(pred)
    t1 = _prep(target)
    w1 = None
    if weight is not None:
        # TODO(synk): for small broadcastable weights (e.g. per-channel) this
        # could be passed compact and indexed in-kernel instead of broadcast.
        wfull = jnp.broadcast_to(jnp.asarray(weight), orig_shape)
        w1 = _prep(wfull)

    # Pad to the 128-lane boundary only when necessary (rare; masked in-kernel).
    n128 = ((n + LANE - 1) // LANE) * LANE
    if n128 != n:
        pad = n128 - n
        p1 = jnp.pad(p1, (0, pad))
        t1 = jnp.pad(t1, (0, pad))
        if w1 is not None:
            w1 = jnp.pad(w1, (0, pad))

    M = n128 // LANE
    p2 = p1.reshape(M, LANE)
    t2 = t1.reshape(M, LANE)
    w2 = w1.reshape(M, LANE) if w1 is not None else None

    rows_blk = M if M <= MAX_BLOCK_ROWS else MAX_BLOCK_ROWS
    grid_m = (M + rows_blk - 1) // rows_blk
    needs_mask = (grid_m * rows_blk * LANE) != n

    emit_loss = reduction not in ("sum", "mean", "instance")
    has_weight = w2 is not None

    kernel = _make_focal_kernel(alpha=alpha, gamma=gamma, n_valid=n,
                                rows_blk=rows_blk, has_weight=has_weight,
                                emit_loss=emit_loss, needs_mask=needs_mask)

    tile_spec = pl.BlockSpec((rows_blk, LANE), lambda i: (i, 0))
    in_arrays = [p2, t2] + ([w2] if has_weight else [])
    in_specs = [tile_spec] * len(in_arrays)

    if emit_loss:
        out_shape = jax.ShapeDtypeStruct((M, LANE), jnp.float32)
        out_specs = tile_spec
    else:
        part_spec = pl.BlockSpec((1, LANE), lambda i: (i, 0))
        out_shape = (jax.ShapeDtypeStruct((grid_m, LANE), jnp.float32),
                     jax.ShapeDtypeStruct((grid_m, LANE), jnp.float32))
        out_specs = (part_spec, part_spec)

    out = pl.pallas_call(
        kernel,
        out_shape=out_shape,
        grid_spec=pltpu.PrefetchScalarGridSpec(
            num_scalar_prefetch=0,
            grid=(grid_m,),
            in_specs=in_specs,
            out_specs=out_specs,
        ),
        compiler_params=pltpu.CompilerParams(
            dimension_semantics=("parallel",)),
    )(*in_arrays)

    if emit_loss:
        # 'none' (or unknown) reduction: elementwise loss in original shape.
        return out.ravel()[:n].reshape(orig_shape)

    sum_part, pos_part = out
    total = jnp.sum(sum_part)
    if reduction == "sum":
        return total
    if reduction == "mean":
        return total / jnp.float32(n)
    # 'instance'
    pcount = jnp.sum(pos_part)
    return total / jnp.maximum(pcount, 1.0)


def _focal_loss_ref(pred, target, weight=None, *, alpha=-1.0, gamma=2.0,
                    reduction="instance"):
    pred = jnp.asarray(pred, jnp.float32)
    target = jnp.asarray(target, jnp.float32)
    ploss = -target * (1.0 - pred) ** gamma * jnp.log(pred + 1e-10)
    nloss = -(1.0 - target) * pred ** gamma * jnp.log(1.0 - pred + 1e-10)
    loss = alpha * ploss + (1.0 - alpha) * nloss if alpha >= 0 else ploss + nloss
    if weight is not None:
        loss = loss * jnp.asarray(weight, jnp.float32)
    r = reduction.lower()
    if r == "sum":
        return loss.sum()
    if r == "mean":
        return loss.mean()
    if r == "instance":
        pnum = jnp.maximum((target >= 1.0).sum(), 1)
        return loss.sum() / pnum
    return loss


if __name__ == "__main__":
    key = jax.random.PRNGKey(0)
    k1, k2, k3, k4 = jax.random.split(key, 4)

    # Module defaults: alpha=-1, gamma=2, reduction='instance'
    pred = jax.nn.sigmoid(jax.random.normal(k1, (2, 4, 16, 16), jnp.float32))
    target = jax.random.bernoulli(k2, 0.3, (2, 4, 16, 16)).astype(jnp.float32)

    def check(out, ref):
        out = jax.block_until_ready(out)
        assert jnp.allclose(out, ref, rtol=1e-5, atol=1e-5), (out, ref)

    # default 'instance'
    check(focal_loss(pred, target), _focal_loss_ref(pred, target))
    # 'sum' / 'mean'
    check(focal_loss(pred, target, reduction="sum"),
          _focal_loss_ref(pred, target, reduction="sum"))
    check(focal_loss(pred, target, reduction="mean"),
          _focal_loss_ref(pred, target, reduction="mean"))
    # 'none' (elementwise) path
    check(focal_loss(pred, target, reduction="none"),
          _focal_loss_ref(pred, target, reduction="none"))
    # weighted path (broadcast per-channel weight) + alpha branch
    w = jnp.arange(1, 5, dtype=jnp.float32).reshape(1, 4, 1, 1)
    check(focal_loss(pred, target, w, alpha=0.25, reduction="sum"),
          _focal_loss_ref(pred, target, jnp.broadcast_to(w, pred.shape),
                          alpha=0.25, reduction="sum"))
    # odd size (exercises the 128-pad + in-kernel tail mask) and non-int gamma
    pred2 = jax.nn.sigmoid(jax.random.normal(k3, (3, 5, 7, 9), jnp.float32))
    target2 = jax.random.bernoulli(k4, 0.3, (3, 5, 7, 9)).astype(jnp.float32)
    check(focal_loss(pred2, target2), _focal_loss_ref(pred2, target2))
    check(focal_loss(pred2, target2, gamma=1.5, reduction="mean"),
          _focal_loss_ref(pred2, target2, gamma=1.5, reduction="mean"))

    print("KERNEL_OK")
</pallas_src>

<mosaic_0001>
module attributes {stable_mosaic.version = 11 : i64} {
  func.func @kernel(%arg0: i32, %arg1: memref<16x128xf32, #tpu.memory_space<vmem>>, %arg2: memref<16x128xf32, #tpu.memory_space<vmem>>, %arg3: memref<1x128xf32, #tpu.memory_space<vmem>>, %arg4: memref<1x128xf32, #tpu.memory_space<vmem>>) attributes {dimension_semantics = [#tpu.dimension_semantics<parallel>], iteration_bounds = array<i64: 1>, scalar_prefetch = 0 : i64, scratch_operands = 0 : i64, tpu.core_type = #tpu.core_type<tc>, window_params = [{transform_indices = @transform_0, window_bounds = array<i64: 16, 128>}, {transform_indices = @transform_1, window_bounds = array<i64: 16, 128>}, {transform_indices = @transform_2, window_bounds = array<i64: 1, 128>}, {transform_indices = @transform_3, window_bounds = array<i64: 1, 128>}]} {
    %c0 = arith.constant 0 : index
    %c0_0 = arith.constant 0 : index
    %0 = vector.load %arg1[%c0, %c0_0] : memref<16x128xf32, #tpu.memory_space<vmem>>, vector<16x128xf32>
    %c0_1 = arith.constant 0 : index
    %c0_2 = arith.constant 0 : index
    %1 = vector.load %arg2[%c0_1, %c0_2] : memref<16x128xf32, #tpu.memory_space<vmem>>, vector<16x128xf32>
    %cst = arith.constant 1.000000e+00 : f32
    %2 = vector.broadcast %cst : f32 to vector<16x128xf32>
    %3 = arith.subf %2, %0 : vector<16x128xf32>
    %4 = arith.mulf %0, %0 : vector<16x128xf32>
    %5 = arith.mulf %3, %3 : vector<16x128xf32>
    %cst_3 = arith.constant 0.000000e+00 : f32
    %6 = vector.broadcast %cst_3 : f32 to vector<16x128xf32>
    %7 = arith.subf %6, %1 : vector<16x128xf32>
    %8 = arith.mulf %7, %5 : vector<16x128xf32>
    %cst_4 = arith.constant 1.000000e-10 : f32
    %9 = vector.broadcast %cst_4 : f32 to vector<16x128xf32>
    %10 = arith.addf %0, %9 : vector<16x128xf32>
    %11 = math.log %10 : vector<16x128xf32>
    %12 = arith.mulf %8, %11 : vector<16x128xf32>
    %cst_5 = arith.constant 1.000000e+00 : f32
    %13 = vector.broadcast %cst_5 : f32 to vector<16x128xf32>
    %14 = arith.subf %13, %1 : vector<16x128xf32>
    %cst_6 = arith.constant 0.000000e+00 : f32
    %15 = vector.broadcast %cst_6 : f32 to vector<16x128xf32>
    %16 = arith.subf %15, %14 : vector<16x128xf32>
    %17 = arith.mulf %16, %4 : vector<16x128xf32>
    %cst_7 = arith.constant 1.000000e-10 : f32
    %18 = vector.broadcast %cst_7 : f32 to vector<16x128xf32>
    %19 = arith.addf %3, %18 : vector<16x128xf32>
    %20 = math.log %19 : vector<16x128xf32>
    %21 = arith.mulf %17, %20 : vector<16x128xf32>
    %22 = arith.addf %12, %21 : vector<16x128xf32>
    %cst_8 = arith.constant dense<0.000000e+00> : vector<128xf32>
    %23 = vector.multi_reduction <add>, %22, %cst_8 [0] : vector<16x128xf32> to vector<128xf32>
    %24 = vector.shape_cast %23 : vector<128xf32> to vector<1x128xf32>
    %c0_9 = arith.constant 0 : index
    %c0_10 = arith.constant 0 : index
    %25 = vector.load %arg3[%c0_9, %c0_10] : memref<1x128xf32, #tpu.memory_space<vmem>>, vector<1x128xf32>
    tpu.vector_store %arg3[%c0_9, %c0_10], %24 {strides = array<i32>} : memref<1x128xf32, #tpu.memory_space<vmem>>, vector<1x128xf32>,
    %cst_11 = arith.constant 1.000000e+00 : f32
    %26 = vector.broadcast %cst_11 : f32 to vector<16x128xf32>
    %27 = arith.cmpf oge, %1, %26 : vector<16x128xf32>
    %28 = arith.extui %27 : vector<16x128xi1> to vector<16x128xi32>
    %29 = arith.sitofp %28 : vector<16x128xi32> to vector<16x128xf32>
    %cst_12 = arith.constant dense<0.000000e+00> : vector<128xf32>
    %30 = vector.multi_reduction <add>, %29, %cst_12 [0] : vector<16x128xf32> to vector<128xf32>
    %31 = vector.shape_cast %30 : vector<128xf32> to vector<1x128xf32>
    %c0_13 = arith.constant 0 : index
    %c0_14 = arith.constant 0 : index
    %32 = vector.load %arg4[%c0_13, %c0_14] : memref<1x128xf32, #tpu.memory_space<vmem>>, vector<1x128xf32>
    tpu.vector_store %arg4[%c0_13, %c0_14], %31 {strides = array<i32>} : memref<1x128xf32, #tpu.memory_space<vmem>>, vector<1x128xf32>,
    return
  }
  func.func @transform_0(%arg0: i32) -> (i32, i32) {
    %c0_i32 = arith.constant 0 : i32
    %c0_i32_0 = arith.constant 0 : i32
    return %arg0, %c0_i32 : i32, i32
  }
  func.func @transform_1(%arg0: i32) -> (i32, i32) {
    %c0_i32 = arith.constant 0 : i32
    %c0_i32_0 = arith.constant 0 : i32
    return %arg0, %c0_i32 : i32, i32
  }
  func.func @transform_2(%arg0: i32) -> (i32, i32) {
    %c0_i32 = arith.constant 0 : i32
    %c0_i32_0 = arith.constant 0 : i32
    return %arg0, %c0_i32 : i32, i32
  }
  func.func @transform_3(%arg0: i32) -> (i32, i32) {
    %c0_i32 = arith.constant 0 : i32
    %c0_i32_0 = arith.constant 0 : i32
    return %arg0, %c0_i32 : i32, i32
  }
}

</mosaic_0001>

<bundles_post_ra>
// kernel: tpu_custom_call.1
= control target key start
LH: loop header
LB: loop body
LE: loop exit
PB: predicated region body
PF: predicated region fallthrough
CT: control target
= control target key end

     0   :  { %9 = vsyncpa [#allocation3], 0  ;;  %s321_s0 = inlined_call_operand.hbm [shape: f32[16,128], index: 0, kind: input, shape index: {}]   ;;  %s322_s1 = inlined_call_operand.hbm [shape: f32[16,128], index: 1, kind: input, shape index: {}]   ;;  %s323_s2 = inlined_call_operand.hbm [shape: f32[1,128], index: 2, kind: output, shape index: {0}]   ;;  %s324_s3 = inlined_call_operand.hbm [shape: f32[1,128], index: 3, kind: output, shape index: {1}]  }
   0x1   :  { %10 = vsyncpa [#allocation6], 0 }
   0x2   :  { %11 = vsyncpa [#allocation4], 0 }
   0x3   :  { %12 = vsyncpa [#allocation9], 0  ;;  %s246_s12 = smov [#allocation2]   ;;  %s150_s16 = scalar_lea.hbm %s321_s0, 256 }
   0x4   :  { %s18_s13 = sshll.u32 %s246_s12, 4  ;;  %p151_p0 = scmp.ne.s32.totalorder %s321_s0, %s150_s16  ;;  %s19_s13 = int_to_ptr.vmem [resolvable:$true] %s18_s13 }
   0x5   :  { %p154_p1 = scmp.lt.u32.totalorder %s150_s16, %s321_s0 }
   0x7   :  { %p156_p2 = pnand %p154_p1, %p151_p0 }
   0x9   :  { %159 = shalt.err (!%p156_p2)
}
   0xa   :  { %s160_s21 = scalar_lea.vmem %s19_s13, 256  ;;  %p165_p4 = scmp.lt.s32.totalorder %s19_s13, %s19_s13 }
   0xb   :  { %p161_p3 = scmp.ne.s32.totalorder %s19_s13, %s160_s21  ;;  %p166_p5 = scmp.lt.s32.totalorder %s160_s21, %s160_s21 }
   0xd   :  { %p167_p6 = por %p166_p5, %p165_p4 }
   0xf   :  { %p168_p7 = pnand %p167_p6, %p161_p3 }
  0x11   :  { %171 = shalt.err (!%p168_p7)
}
  0x12   :  { %s247_s22 = smov 128   ;;  %s248_s23 = smov 8  }
  0x13   :  { %24 = dma.hbm_to_vmem [thread:$0]  %s321_s0, 256, %s19_s13, [#allocation3], %s247_s22, %s247_s22, %s248_s23  }
  0x14   :  { %s249_s26 = smov [#allocation5]   ;;  %s172_s30 = scalar_lea.hbm %s322_s1, 256 }
  0x15   :  { %s30_s27 = sshll.u32 %s249_s26, 4  ;;  %p173_p8 = scmp.ne.s32.totalorder %s322_s1, %s172_s30  ;;  %s31_s27 = int_to_ptr.vmem [resolvable:$true] %s30_s27 }
  0x16   :  { %p176_p9 = scmp.lt.u32.totalorder %s172_s30, %s322_s1 }
  0x18   :  { %p178_p10 = pnand %p176_p9, %p173_p8 }
  0x1a   :  { %181 = shalt.err (!%p178_p10)
}
  0x1b   :  { %s182_s8 = scalar_lea.vmem %s31_s27, 256  ;;  %p187_p12 = scmp.lt.s32.totalorder %s31_s27, %s31_s27 }
  0x1c   :  { %p183_p11 = scmp.ne.s32.totalorder %s31_s27, %s182_s8  ;;  %p188_p13 = scmp.lt.s32.totalorder %s182_s8, %s182_s8 }
  0x1e   :  { %p189_p0 = por %p188_p13, %p187_p12 }
  0x20   :  { %p190_p1 = pnand %p189_p0, %p183_p11 }
  0x22   :  { %193 = shalt.err (!%p190_p1)
}
  0x23   :  { %36 = dma.hbm_to_vmem [thread:$0]  %s322_s1, 256, %s31_s27, [#allocation6], %s247_s22, %s247_s22, %s248_s23  }
  0x24   :  { %238 = dma.done.wait [#allocation3], 256  }
  0x25   :  { %239 = vsyncadd [#allocation3], 4294967040 }
  0x26   :  { %240 = dma.done.wait [#allocation6], 256  }
  0x27   :  { %241 = vsyncadd [#allocation6], 4294967040  ;;  %v43_v0 = vld [vmem:[#allocation2] sm:$0xff]  ;;  %v44_v1 = vld [vmem:[#allocation2 + $0x8] sm:$0xff]  ;;  %v250_v10 = vmov 0.0   ;;  %s251_s1 = smov [#allocation8]  }
  0x28   :  { %v47_v2 = vsub.f32 1.0, %v43_v0  ;;  %v48_v3 = vsub.f32 1.0, %v44_v1  ;;  %v57_v4 = vadd.f32 1e-10, %v43_v0  ;;  %v58_v5 = vadd.f32 1e-10, %v44_v1 }
  0x29   :  { %v45_v6 = vld [vmem:[#allocation5] sm:$0xff]  ;;  %v46_v9 = vld [vmem:[#allocation5 + $0x8] sm:$0xff]  ;;  %v49_v21 = vmul.f32 %v43_v0, %v43_v0  ;;  %v50_v23 = vmul.f32 %v44_v1, %v44_v1  ;;  %s119_s10 = sshll.u32 %s251_s1, 4  ;;  %s120_s10 = int_to_ptr.vmem [resolvable:$true] %s119_s10 }
  0x2a   :  { %142 = vlog2.f32 %v57_v4  ;;  %v71_v7 = vadd.f32 1e-10, %v47_v2  ;;  %v72_v8 = vadd.f32 1e-10, %v48_v3  ;;  %vm89_vm0 = vcmp.ge.f32.partialorder %v45_v6, 1.0  ;;  %s194_s11 = scalar_lea.vmem %s120_s10, 16  ;;  %p199_p3 = scmp.lt.s32.totalorder %s120_s10, %s120_s10 }
  0x2b   :  { %144 = vlog2.f32 %v58_v5  ;;  %vm90_vm1 = vcmp.ge.f32.partialorder %v46_v9, 1.0  ;;  %v133_v11 = vsel %vm89_vm0, 1.0, %v250_v10  ;;  %v65_v12 = vsub.f32 1.0, %v45_v6  ;;  %p195_p2 = scmp.ne.s32.totalorder %s120_s10, %s194_s11  ;;  %s198_s12 = scalar_lea.vmem %s120_s10, 32 }
  0x2c   :  { %146 = vlog2.f32 %v71_v7  ;;  %v134_v13 = vsel %vm90_vm1, 1.0, %v250_v10  ;;  %v66_v14 = vsub.f32 1.0, %v46_v9  ;;  %v51_v16 = vmul.f32 %v47_v2, %v47_v2  ;;  %p200_p4 = scmp.lt.s32.totalorder %s198_s12, %s194_s11 }
  0x2d   :  { %148 = vlog2.f32 %v72_v8  ;;  %v95_v15 = vadd.f32 %v134_v13, %v133_v11  ;;  %v53_v17 = vsub.f32 0.0, %v45_v6  ;;  %v52_v18 = vmul.f32 %v48_v3, %v48_v3 }
  0x2e   :  { %v54_v19 = vsub.f32 0.0, %v46_v9  ;;  %v67_v22 = vsub.f32 0.0, %v65_v12  ;;  %v68_v24 = vsub.f32 0.0, %v66_v14  ;;  %p201_p5 = por %p200_p4, %p199_p3 }
  0x2f   :  { %v96_v20 = vrot.slane %v95_v15, 4  ;;  %v55_v26 = vmul.f32 %v53_v17, %v51_v16 }
  0x30   :  { %v56_v28 = vmul.f32 %v54_v19, %v52_v18  ;;  %v69_v32 = vmul.f32 %v67_v22, %v49_v21  ;;  %v70_v35 = vmul.f32 %v68_v24, %v50_v23  ;;  %p202_p6 = pnand %p201_p5, %p195_p2 }
  0x31   :  { %v97_v25 = vadd.f32 %v96_v20, %v95_v15 }
  0x33   :  { %v98_v29 = vrot.slane %v97_v25, 2 }
  0x34   :  { %v143_v27 = vpop.eup %142 }
  0x35   :  { %v145_v30 = vpop.eup %144  ;;  %v60_v31 = vmul.f32 0.6931472, %v143_v27  ;;  %v99_v36 = vadd.f32 %v98_v29, %v97_v25 }
  0x36   :  { %v147_v33 = vpop.eup %146  ;;  %v62_v34 = vmul.f32 0.6931472, %v145_v30 }
  0x37   :  { %v149_v37 = vpop.eup %148  ;;  %v63_v38 = vmul.f32 %v60_v31, %v55_v26  ;;  %v74_v39 = vmul.f32 0.6931472, %v147_v33  ;;  %v100_v42 = vrot.slane %v99_v36, 1 }
  0x38   :  { %v64_v40 = vmul.f32 %v62_v34, %v56_v28  ;;  %v76_v41 = vmul.f32 0.6931472, %v149_v37 }
  0x39   :  { %v77_v43 = vmul.f32 %v74_v39, %v69_v32  ;;  %v101_v45 = vadd.f32 %v100_v42, %v99_v36 }
  0x3a   :  { %v78_v44 = vmul.f32 %v76_v41, %v70_v35 }
  0x3b   :  { %v79_v46 = vadd.f32 %v77_v43, %v63_v38  ;;  %102 = vst [vmem:[#allocation8] sm:$0x1] %v101_v45 }
  0x3c   :  { %v80_v47 = vadd.f32 %v78_v44, %v64_v40 }
  0x3d   :  { %205 = shalt.err (!%p202_p6)
}
  0x3e   :  { %s206_s15 = scalar_lea.hbm %s324_s3, 16 }
  0x3f   :  { %p207_p7 = scmp.ne.s32.totalorder %s324_s3, %s206_s15  ;;  %p210_p8 = scmp.lt.u32.totalorder %s206_s15, %s324_s3 }
  0x41   :  { %p212_p9 = pnand %p210_p8, %p207_p7 }
  0x43   :  { %215 = shalt.err (!%p212_p9)
}
  0x44   :  { %122 = dma.vmem_to_hbm [thread:$0]  %s120_s10, 16, %s324_s3, [#allocation9]   ;;  %v81_v48 = vadd.f32 %v80_v47, %v79_v46 }
  0x45   :  { %s252_s22 = smov [#allocation7]  }
  0x46   :  { %v82_v49 = vrot.slane %v81_v48, 4  ;;  %s109_s23 = sshll.u32 %s252_s22, 4  ;;  %s110_s23 = int_to_ptr.vmem [resolvable:$true] %s109_s23 }
  0x47   :  { %s216_s24 = scalar_lea.vmem %s110_s23, 16  ;;  %s220_s25 = scalar_lea.vmem %s110_s23, 32 }
  0x48   :  { %v83_v50 = vadd.f32 %v82_v49, %v81_v48  ;;  %p217_p10 = scmp.ne.s32.totalorder %s110_s23, %s216_s24  ;;  %p221_p11 = scmp.lt.s32.totalorder %s110_s23, %s110_s23 }
  0x49   :  { %p222_p12 = scmp.lt.s32.totalorder %s220_s25, %s216_s24 }
  0x4a   :  { %v84_v51 = vrot.slane %v83_v50, 2 }
  0x4b   :  { %p223_p13 = por %p222_p12, %p221_p11 }
  0x4c   :  { %v85_v52 = vadd.f32 %v84_v51, %v83_v50 }
  0x4d   :  { %p224_p0 = pnand %p223_p13, %p217_p10 }
  0x4e   :  { %v86_v53 = vrot.slane %v85_v52, 1 }
  0x50   :  { %v87_v54 = vadd.f32 %v86_v53, %v85_v52 }
  0x52   :  { %88 = vst [vmem:[#allocation7] sm:$0x1] %v87_v54 }
  0x53   :  { %227 = shalt.err (!%p224_p0)
}
  0x54   :  { %s228_s27 = scalar_lea.hbm %s323_s2, 16 }
  0x55   :  { %p229_p1 = scmp.ne.s32.totalorder %s323_s2, %s228_s27  ;;  %p232_p2 = scmp.lt.u32.totalorder %s228_s27, %s323_s2 }
  0x57   :  { %p234_p3 = pnand %p232_p2, %p229_p1 }
  0x59   :  { %237 = shalt.err (!%p234_p3)
}
  0x5a   :  { %112 = dma.vmem_to_hbm [thread:$0]  %s110_s23, 16, %s323_s2, [#allocation4]  }
  0x5b   :  { %242 = dma.done.wait [#allocation4], 16  }
  0x5c   :  { %243 = vsyncadd [#allocation4], 4294967280 }
  0x5d   :  { %244 = dma.done.wait [#allocation9], 16  }
  0x5e   :  { %245 = vsyncadd [#allocation9], 4294967280 }
  0x5f   :  { %129 = vsyncpa [#allocation3], 1 }
  0x60   :  { %130 = vsyncpa [#allocation6], 1 }
  0x61   :  { %131 = vsyncpa [#allocation4], 1 }
  0x62   :  { %132 = vsyncpa [#allocation9], 1 }

</bundles_post_ra>
